<compile_context>
chip_gen: v6e
topology: v6e:2x2x1
jax: 0.10.0
libtpu: 0.0.40
codegen_flags: <defaults>
</compile_context>

<pallas_src>
import functools

import jax
import jax.numpy as jnp
from jax.experimental import pallas as pl
from jax.experimental.pallas import tpu as pltpu


def _round_up(n, m):
    return -(-n // m) * m


def _tokenizer_kernel(x_ref, w_ref, b_ref, o_ref, *, ft, d, prec):
    # x_ref: (tb, Ft) batch-tile of features for this feature tile
    # w_ref: (1, Ft*D) flattened weight tile; b_ref: (1, Ft*D) flattened bias tile
    # o_ref: (tb, Ft*D) lane-dense output slab
    ftd = ft * d
    # Build the block-diagonal expansion in-kernel:
    #   w_exp[r, c] = weight[r, c - r*D] if r*D <= c < (r+1)*D else 0
    # Using the flattened weight row: w_flat[0, c] == weight[c // D, c % D],
    # so a sublane broadcast + structural mask gives exactly the right values.
    row = jax.lax.broadcasted_iota(jnp.int32, (ft, ftd), 0)
    col = jax.lax.broadcasted_iota(jnp.int32, (ft, ftd), 1)
    lo = row * d
    mask = (col >= lo) & (col < lo + d)
    w_exp = jnp.where(mask, jnp.broadcast_to(w_ref[...], (ft, ftd)),
                      jnp.zeros((), w_ref.dtype))
    acc = jnp.dot(x_ref[...], w_exp,
                  preferred_element_type=jnp.float32, precision=prec)
    o_ref[...] = (acc + b_ref[...]).astype(o_ref.dtype)


def numerical_feature_tokenizer(x, weight, bias=None, *, out_dtype=None, tb=None):
    """x: (B, F); weight/bias: (F, D). Returns (B, F, D) = weight*x[...,None] + bias."""
    B, F = x.shape
    Fw, D = weight.shape
    assert F == Fw, "x feature dim must match weight rows"
    out_dtype = jnp.dtype(out_dtype) if out_dtype is not None else jnp.dtype(x.dtype)
    o_isize = out_dtype.itemsize

    # ---- feature tiling ----
    # F <= 128: single feature tile (covers typical tabular F; all BlockSpec
    # lane dims are then the full array dims -> always legal).
    # F > 128: Ft = 128 so the x block's lane dim and Ft*D are multiples of 128.
    # TODO(synk): for the (rare) corner F > 128 AND very large d_token, the
    # in-kernel (Ft, Ft*D) block-diag temp grows; sub-tile D there as well.
    if F <= 128:
        Ft, F_pad = F, F
    else:
        Ft = 128
        F_pad = _round_up(F, Ft)
    FtD = Ft * D
    NF = F_pad // Ft

    # Zero-pad trailing *features* only in the multi-tile ragged case (cost is
    # ~1/D of the output traffic). The batch is never padded: ragged batch edge
    # blocks are write-masked by Pallas.
    if F_pad != F:
        x = jnp.pad(x, ((0, 0), (0, F_pad - F)))
        weight = jnp.pad(weight, ((0, F_pad - F), (0, 0)))
        if bias is not None:
            bias = jnp.pad(bias, ((0, F_pad - F), (0, 0)))

    # Flattened parameter rows: contiguous reshapes of tiny (F*D) arrays
    # (NOT the F^2*D expansion; that is built in-kernel per tile).
    w_flat = weight.reshape(1, F_pad * D)
    b_src = bias if bias is not None else jnp.zeros_like(weight)
    b_flat = b_src.reshape(1, F_pad * D)

    # ---- batch tile: ~8 MiB of output per grid step, clamped by explicit VMEM
    #      accounting (2x out bufs + f32 acc temp + 2x x bufs + constants). ----
    row_align = max(8, 32 // o_isize)          # 8 for f32, 16 for bf16
    per_row = FtD * (2 * o_isize + 4) + Ft * 4 * 2
    fixed = 2 * 2 * FtD * 4 + Ft * FtD * 4     # w/b double-buffers + w_exp temp
    if tb is None:
        target_out = 8 << 20
        vmem_budget = 24 << 20
        tb = min(target_out // (FtD * o_isize),
                 max(row_align, (vmem_budget - fixed) // per_row))
    tb = max(row_align, (int(tb) // row_align) * row_align)
    tb = min(tb, _round_up(B, row_align))

    footprint = fixed + tb * per_row
    vmem_limit = int(min(32 << 20, max(16 << 20, footprint + (4 << 20))))

    # Precision: HIGHEST only where the redundant block-diag MACs stay clearly
    # below the memory/compute crossover on all generations; DEFAULT when the
    # output is bf16 anyway.
    if out_dtype == jnp.float32:
        prec = (jax.lax.Precision.HIGHEST if Ft <= 64
                else jax.lax.Precision.HIGH)
    else:
        prec = jax.lax.Precision.DEFAULT

    kernel = functools.partial(_tokenizer_kernel, ft=Ft, d=D, prec=prec)
    grid = (pl.cdiv(B, tb), NF)
    # TODO(synk): on 2-TensorCore parts (v7x) prefer an even batch-step count;
    # needs a hardware query (pltpu.get_tpu_info) to gate, so left generic here.

    out2d = pl.pallas_call(
        kernel,
        out_shape=jax.ShapeDtypeStruct((B, F * D), out_dtype),
        grid_spec=pltpu.PrefetchScalarGridSpec(
            num_scalar_prefetch=0,
            grid=grid,
            in_specs=[
                pl.BlockSpec((tb, Ft), lambda i, j: (i, j)),    # x tile
                pl.BlockSpec((1, FtD), lambda i, j: (0, j)),    # flat weight tile
                pl.BlockSpec((1, FtD), lambda i, j: (0, j)),    # flat bias tile
            ],
            out_specs=pl.BlockSpec((tb, FtD), lambda i, j: (i, j)),
        ),
        compiler_params=pltpu.CompilerParams(
            dimension_semantics=("parallel", "parallel"),
            vmem_limit_bytes=vmem_limit,
        ),
    )(x, w_flat, b_flat)

    # Contiguous row-major reshape -> effectively free.
    return out2d.reshape(B, F, D)


if __name__ == "__main__":
    # Small shapes consistent with the module's forward:
    #   batch=16 samples, in_features=8 scalar features, d_token=32.
    B, F, D = 16, 8, 32

    key = jax.random.PRNGKey(0)
    kx, kw, kb = jax.random.split(key, 3)

    # 'normal' init policy: N(0, 1/d_token) i.e. std = 1/sqrt(d_token).
    d_sqrt_inv = 1.0 / jnp.sqrt(jnp.float32(D))
    x = jax.random.normal(kx, (B, F), dtype=jnp.float32)
    weight = jax.random.normal(kw, (F, D), dtype=jnp.float32) * d_sqrt_inv
    bias = jax.random.normal(kb, (F, D), dtype=jnp.float32) * d_sqrt_inv

    ref = weight[None] * x[..., None] + bias[None]

    out = jax.block_until_ready(numerical_feature_tokenizer(x, weight, bias))
    assert out.shape == (B, F, D)
    assert jnp.allclose(out, ref, atol=1e-5, rtol=1e-5), float(
        jnp.max(jnp.abs(out - ref)))

    # Ragged batch: no padding / post-slice copy, Pallas masks the edge block.
    x2 = x[:13]
    out2 = jax.block_until_ready(numerical_feature_tokenizer(x2, weight, bias))
    ref2 = weight[None] * x2[..., None] + bias[None]
    assert out2.shape == (13, F, D)
    assert jnp.allclose(out2, ref2, atol=1e-5, rtol=1e-5)

    # No-bias path (bias=None in the module constructor).
    out3 = jax.block_until_ready(numerical_feature_tokenizer(x, weight, None))
    assert jnp.allclose(out3, weight[None] * x[..., None], atol=1e-5, rtol=1e-5)

    # bf16 output path (halves the HBM writes of this write-bound op).
    out4 = jax.block_until_ready(
        numerical_feature_tokenizer(x, weight, bias, out_dtype=jnp.bfloat16))
    assert out4.dtype == jnp.bfloat16
    assert jnp.allclose(out4.astype(jnp.float32), ref, atol=3e-2, rtol=3e-2)

    print("KERNEL_OK")
</pallas_src>

<mosaic_0001>
module attributes {stable_mosaic.version = 11 : i64} {
  func.func @_tokenizer_kernel(%arg0: i32, %arg1: i32, %arg2: memref<16x8xf32, #tpu.memory_space<vmem>>, %arg3: memref<1x256xf32, #tpu.memory_space<vmem>>, %arg4: memref<1x256xf32, #tpu.memory_space<vmem>>, %arg5: memref<16x256xf32, #tpu.memory_space<vmem>>) attributes {dimension_semantics = [#tpu.dimension_semantics<parallel>, #tpu.dimension_semantics<parallel>], iteration_bounds = array<i64: 1, 1>, scalar_prefetch = 0 : i64, scratch_operands = 0 : i64, tpu.core_type = #tpu.core_type<tc>, window_params = [{transform_indices = @transform_0, window_bounds = array<i64: 16, 8>}, {transform_indices = @transform_1, window_bounds = array<i64: 1, 256>}, {transform_indices = @transform_2, window_bounds = array<i64: 1, 256>}, {transform_indices = @transform_3, window_bounds = array<i64: 16, 256>}]} {
    %0 = tpu.iota {dimensions = array<i32: 0>} : vector<8x256xi32>
    %1 = tpu.iota {dimensions = array<i32: 1>} : vector<8x256xi32>
    %c32_i32 = arith.constant 32 : i32
    %2 = vector.broadcast %c32_i32 : i32 to vector<8x256xi32>
    %3 = arith.muli %0, %2 : vector<8x256xi32>
    %4 = arith.cmpi sge, %1, %3 : vector<8x256xi32>
    %c32_i32_0 = arith.constant 32 : i32
    %5 = vector.broadcast %c32_i32_0 : i32 to vector<8x256xi32>
    %6 = arith.addi %3, %5 : vector<8x256xi32>
    %7 = arith.cmpi slt, %1, %6 : vector<8x256xi32>
    %8 = arith.andi %4, %7 : vector<8x256xi1>
    %c0 = arith.constant 0 : index
    %c0_1 = arith.constant 0 : index
    %9 = vector.load %arg3[%c0, %c0_1] : memref<1x256xf32, #tpu.memory_space<vmem>>, vector<1x256xf32>
    %10 = vector.shape_cast %9 : vector<1x256xf32> to vector<1x256xf32>
    %11 = vector.broadcast %10 : vector<1x256xf32> to vector<8x256xf32>
    %cst = arith.constant 0.000000e+00 : f32
    %12 = vector.broadcast %cst : f32 to vector<8x256xf32>
    %13 = arith.select %8, %11, %12 : vector<8x256xi1>, vector<8x256xf32>
    %c0_2 = arith.constant 0 : index
    %c0_3 = arith.constant 0 : index
    %14 = vector.load %arg2[%c0_2, %c0_3] : memref<16x8xf32, #tpu.memory_space<vmem>>, vector<16x8xf32>
    %cst_4 = arith.constant dense<0.000000e+00> : vector<16x256xf32>
    %15 = tpu.matmul %14, %13, %cst_4 {dimension_numbers = #tpu.dot_dimension_numbers<[1], [0], [0], [1], [0, 0, 1, 1], [], []>, precision = #tpu.contract_precision<fp32>} : vector<16x8xf32>, vector<8x256xf32>, vector<16x256xf32> -> vector<16x256xf32>
    %c0_5 = arith.constant 0 : index
    %c0_6 = arith.constant 0 : index
    %16 = vector.load %arg4[%c0_5, %c0_6] : memref<1x256xf32, #tpu.memory_space<vmem>>, vector<1x256xf32>
    %17 = vector.broadcast %16 : vector<1x256xf32> to vector<16x256xf32>
    %18 = arith.addf %15, %17 : vector<16x256xf32>
    %c0_7 = arith.constant 0 : index
    %c0_8 = arith.constant 0 : index
    %19 = vector.load %arg5[%c0_7, %c0_8] : memref<16x256xf32, #tpu.memory_space<vmem>>, vector<16x256xf32>
    tpu.vector_store %arg5[%c0_7, %c0_8], %18 {strides = array<i32>} : memref<16x256xf32, #tpu.memory_space<vmem>>, vector<16x256xf32>,
    return
  }
  func.func @transform_0(%arg0: i32, %arg1: i32) -> (i32, i32) {
    %c0_i32 = arith.constant 0 : i32
    return %arg0, %arg1 : i32, i32
  }
  func.func @transform_1(%arg0: i32, %arg1: i32) -> (i32, i32) {
    %c0_i32 = arith.constant 0 : i32
    %c0_i32_0 = arith.constant 0 : i32
    return %c0_i32, %arg1 : i32, i32
  }
  func.func @transform_2(%arg0: i32, %arg1: i32) -> (i32, i32) {
    %c0_i32 = arith.constant 0 : i32
    %c0_i32_0 = arith.constant 0 : i32
    return %c0_i32, %arg1 : i32, i32
  }
  func.func @transform_3(%arg0: i32, %arg1: i32) -> (i32, i32) {
    %c0_i32 = arith.constant 0 : i32
    return %arg0, %arg1 : i32, i32
  }
}

</mosaic_0001>

<bundles_post_ra>
// kernel: tpu_custom_call.1
= control target key start
LH: loop header
LB: loop body
LE: loop exit
PB: predicated region body
PF: predicated region fallthrough
CT: control target
= control target key end

     0   :  { %v15_v0 = vlaneseq  ;;  %vm56_vm0 = vcmask 64512   ;;  %v623_v3 = vmov 0.0   ;;  %s699_s0 = inlined_call_operand.vmem [shape: f32[16,8], index: 0, kind: input, shape index: {}]   ;;  %s700_s1 = inlined_call_operand.vmem [shape: f32[1,256], index: 1, kind: input, shape index: {}]   ;;  %s701_s2 = inlined_call_operand.vmem [shape: f32[1,256], index: 2, kind: input, shape index: {}]   ;;  %s702_s3 = inlined_call_operand.hbm [shape: f32[16,256], index: 3, kind: output, shape index: {}]  }
   0x1   :  { %v42_v1 = vld [vmem:[%s699_s0] sm:$0xff]  ;;  %v43_v2 = vld [vmem:[%s699_s0 + $0x8] sm:$0xff]  ;;  %129 = vmatprep.mubr.f32.mxu0 %v623_v3  ;;  %226 = vmatprep.mubr.f32.mxu1 %v623_v3 }
   0x2   :  { %v58_v4 = vsel %vm56_vm0, %v42_v1, 0  ;;  %v61_v5 = vsel %vm56_vm0, %v43_v2, 0 }
   0x3   :  { %8 = vsyncpa [#allocation3], 0  ;;  %v655_v6 = vshrl.u32 %v15_v0, 7  ;;  %v18_v7 = vand.u32 127, %v15_v0  ;;  %v657_v8 = vand.u32 4294901760, %v58_v4  ;;  %v659_v9 = vand.u32 4294901760, %v61_v5 }
   0x4   :  { %v28_v10 = vld [vmem:[%s700_s1] sm:$0x3] }
   0x5   :  { %v19_v11 = vadd.s32 128, %v18_v7  ;;  %v20_v12 = vmul.u32 32, %v655_v6  ;;  %v36_v13 = vsub.s32 1, %v655_v6  ;;  %v32_v14 = vsub.s32 0, %v655_v6  ;;  %v44_v39 = vld [vmem:[%s701_s2] sm:$0x3] }
   0x6   :  { %v131_v15 = vsub.f32 %v58_v4, %v657_v8  ;;  %v142_v16 = vsub.f32 %v61_v5, %v659_v9  ;;  %s624_s2 = smov [#allocation2]  }
   0x7   :  { %vm22_vm1 = vcmp.ge.s32.totalorder %v19_v11, %v20_v12  ;;  %v23_v17 = vadd.s32 32, %v20_v12  ;;  %v37_v18 = vrot.slane %v28_v10, %v36_v13  ;;  %vm21_vm2 = vcmp.ge.s32.totalorder %v18_v7, %v20_v12  ;;  %s586_s18 = sshll.u32 %s624_s2, 4  ;;  %s587_s18 = int_to_ptr.vmem [resolvable:$true] %s586_s18 }
   0x8   :  { %v33_v19 = vrot.slane %v28_v10, %v32_v14  ;;  %v132_v20 = vand.u32 4294901760, %v131_v15  ;;  %v143_v21 = vand.u32 4294901760, %v142_v16  ;;  %v49_v42 = vrot.slane %v44_v39, %v32_v14  ;;  %s601_s19 = scalar_lea.vmem %s587_s18, 512  ;;  %p606_p1 = scmp.lt.s32.totalorder %s587_s18, %s587_s18 }
   0x9   :  { %vm25_vm3 = vcmp.lt.s32.totalorder %v19_v11, %v23_v17  ;;  %vm24_vm4 = vcmp.lt.s32.totalorder %v18_v7, %v23_v17  ;;  %v53_v46 = vrot.slane %v44_v39, %v36_v13  ;;  %p602_p0 = scmp.ne.s32.totalorder %s587_s18, %s601_s19  ;;  %p607_p2 = scmp.lt.s32.totalorder %s601_s19, %s601_s19 }
   0xa   :  { %vm27_vm5 = vmand %vm22_vm1, %vm25_vm3  ;;  %v133_v22 = vsub.f32 %v131_v15, %v132_v20  ;;  %v144_v27 = vsub.f32 %v142_v16, %v143_v21 }
   0xb   :  { %v41_v23 = vsel %vm27_vm5, %v37_v18, 0.0  ;;  %vm26_vm6 = vmand %vm21_vm2, %vm24_vm4  ;;  %p608_p3 = por %p607_p2, %p606_p1 }
   0xc   :  { %v93_v24 = vand.u32 4294901760, %v41_v23  ;;  %v40_v25 = vsel %vm26_vm6, %v33_v19, 0.0  ;;  %v134_v26 = vand.u32 4294901760, %v133_v22  ;;  %v145_v31 = vand.u32 4294901760, %v144_v27 }
   0xd   :  { %v95_v28 = vand.u32 4294901760, %v40_v25  ;;  %p609_p4 = pnand %p608_p3, %p602_p0 }
   0xe   :  { %94 = vmatprep.subr.mxu0 %v93_v24  ;;  %v183_v29 = vsub.f32 %v41_v23, %v93_v24 }
   0xf   :  { %96 = vmatpush1.msra.mxu0 %v95_v28  ;;  %v189_v30 = vsub.f32 %v40_v25, %v95_v28 }
  0x10   :  { %135 = vmatmul.mubr.f32.vlgmr.msra.gmra.mxu0 %v134_v26  ;;  %v184_v32 = vand.u32 4294901760, %v183_v29  ;;  %273 = vmatprep.subr.mxu0 %v183_v29 }
  0x11   :  { %140 = vmatprep.mubr.f32.mxu0 %v623_v3  ;;  %v190_v33 = vand.u32 4294901760, %v189_v30  ;;  %276 = vmatpush1.msra.mxu0 %v189_v30 }
  0x12   :  { %v185_v34 = vsub.f32 %v183_v29, %v184_v32  ;;  %444 = vmatprep.subr.mxu0 %v184_v32 }
  0x13   :  { %v191_v35 = vsub.f32 %v189_v30, %v190_v33 }
  0x14   :  { %146 = vmatmul.mubr.f32.gmra.mxu0 %v145_v31  ;;  %v186_v36 = vand.u32 4294901760, %v185_v34 }
  0x15   :  { %v192_v37 = vand.u32 4294901760, %v191_v35  ;;  %309 = vmatprep.mubr.f32.mxu0 %v623_v3 }
  0x16   :  { %187 = vmatprep.subr.mxu1 %v186_v36 }
  0x17   :  { %193 = vmatpush1.msra.mxu1 %v192_v37 }
  0x18   :  { %228 = vmatmul.mubr.f32.vlgmr.msra.gmra.mxu1 %v657_v8  ;;  %357 = vmatprep.subr.mxu1 %v93_v24 }
  0x19   :  { %359 = vmatpush1.msra.mxu1 %v95_v28  ;;  %312 = vmatmul.mubr.f32.vlgmr.msra.gmra.mxu0 %v131_v15 }
  0x1a   :  { %233 = vmatprep.mubr.f32.mxu1 %v623_v3  ;;  %317 = vmatprep.mubr.f32.mxu0 %v623_v3 }
  0x1b   :  { %448 = vmatpush1.msra.mxu0 %v190_v33  ;;  %527 = vmatprep.subr.mxu1 %v93_v24 }
  0x1c   :  { %235 = vmatmul.mubr.f32.gmra.mxu1 %v659_v9 }
  0x1d   :  { %320 = vmatmul.mubr.f32.gmra.mxu0 %v142_v16  ;;  %392 = vmatprep.mubr.f32.mxu1 %v623_v3 }
  0x1e   :  { %481 = vmatprep.mubr.f32.mxu0 %v623_v3 }
  0x20   :  { %396 = vmatmul.mubr.f32.vlgmr.msra.gmra.mxu1 %v132_v20 }
  0x21   :  { %529 = vmatpush1.msra.mxu1 %v95_v28  ;;  %483 = vmatmul.mubr.f32.vlgmr.msra.gmra.mxu0 %v657_v8 }
  0x22   :  { %401 = vmatprep.mubr.f32.mxu1 %v623_v3  ;;  %488 = vmatprep.mubr.f32.mxu0 %v623_v3 }
  0x24   :  { %405 = vmatmul.mubr.f32.gmra.mxu1 %v143_v21 }
  0x25   :  { %490 = vmatmul.mubr.f32.gmra.mxu0 %v659_v9  ;;  %562 = vmatprep.mubr.f32.mxu1 %v623_v3 }
  0x28   :  { %564 = vmatmul.mubr.f32.vlgmr.msra.gmra.mxu1 %v657_v8 }
  0x29   :  { %569 = vmatprep.mubr.f32.mxu1 %v623_v3 }
  0x2c   :  { %571 = vmatmul.mubr.f32.gmra.mxu1 %v659_v9 }
  0xd0   :  { %v136_v38 = vpop.f32.mrf.mxu0 }
  0xd1   :  { %v137_v45 = vadd.f32 %v136_v38, %v49_v42 }
  0xd2   :  { %v138_v40 = vpop.f32.mrf.mxu0 }
  0xd3   :  { %v139_v51 = vadd.f32 %v138_v40, %v53_v46 }
  0xd4   :  { %v147_v41 = vpop.f32.mrf.mxu0 }
  0xd5   :  { %v148_v52 = vadd.f32 %v147_v41, %v49_v42 }
  0xd6   :  { %v149_v43 = vpop.f32.mrf.mxu0 }
  0xd7   :  { %v150_v59 = vadd.f32 %v149_v43, %v53_v46 }
  0xd8   :  { %v229_v44 = vpop.f32.mrf.mxu1 }
  0xd9   :  { %v313_v47 = vpop.f32.mrf.mxu0  ;;  %v230_v53 = vadd.f32 %v229_v44, %v137_v45 }
  0xda   :  { %v231_v48 = vpop.f32.mrf.mxu1 }
  0xdb   :  { %v315_v49 = vpop.f32.mrf.mxu0  ;;  %v232_v56 = vadd.f32 %v231_v48, %v139_v51  ;;  %v314_v60 = vadd.f32 %v313_v47, %v230_v53 }
  0xdc   :  { %v236_v50 = vpop.f32.mrf.mxu1 }
  0xdd   :  { %v321_v54 = vpop.f32.mrf.mxu0  ;;  %v237_v61 = vadd.f32 %v236_v50, %v148_v52  ;;  %v316_v0 = vadd.f32 %v315_v49, %v232_v56 }
  0xde   :  { %v238_v55 = vpop.f32.mrf.mxu1 }
  0xdf   :  { %v323_v57 = vpop.f32.mrf.mxu0  ;;  %v239_v1 = vadd.f32 %v238_v55, %v150_v59  ;;  %v322_v5 = vadd.f32 %v321_v54, %v237_v61 }
  0xe0   :  { %v397_v58 = vpop.f32.mrf.mxu1 }
  0xe1   :  { %v484_v62 = vpop.f32.mrf.mxu0  ;;  %v398_v2 = vadd.f32 %v397_v58, %v314_v60  ;;  %v324_v9 = vadd.f32 %v323_v57, %v239_v1 }
  0xe2   :  { %v399_v63 = vpop.f32.mrf.mxu1 }
  0xe3   :  { %v486_v3 = vpop.f32.mrf.mxu0  ;;  %v400_v6 = vadd.f32 %v399_v63, %v316_v0  ;;  %v485_v10 = vadd.f32 %v484_v62, %v398_v2 }
  0xe4   :  { %v406_v4 = vpop.f32.mrf.mxu1 }
  0xe5   :  { %v491_v8 = vpop.f32.mrf.mxu0  ;;  %v407_v11 = vadd.f32 %v406_v4, %v322_v5  ;;  %v487_v13 = vadd.f32 %v486_v3, %v400_v6 }
  0xe6   :  { %v408_v7 = vpop.f32.mrf.mxu1 }
  0xe7   :  { %v409_v14 = vadd.f32 %v408_v7, %v324_v9  ;;  %v493_v16 = vpop.f32.mrf.mxu0  ;;  %v492_v18 = vadd.f32 %v491_v8, %v407_v11 }
  0xe8   :  { %v565_v12 = vpop.f32.mrf.mxu1 }
  0xe9   :  { %v566_v15 = vadd.f32 %v565_v12, %v485_v10  ;;  %v494_v21 = vadd.f32 %v493_v16, %v409_v14 }
  0xea   :  { %v567_v17 = vpop.f32.mrf.mxu1 }
  0xeb   :  { %577 = vst [vmem:[#allocation2] sm:$0xff] %v566_v15  ;;  %v568_v19 = vadd.f32 %v567_v17, %v487_v13 }
  0xec   :  { %v572_v20 = vpop.f32.mrf.mxu1 }
  0xed   :  { %578 = vst [vmem:[#allocation2 + $0x8] sm:$0xff] %v568_v19  ;;  %v573_v22 = vadd.f32 %v572_v20, %v492_v18 }
  0xee   :  { %v574_v23 = vpop.f32.mrf.mxu1 }
  0xef   :  { %579 = vst [vmem:[#allocation2 + $0x10] sm:$0xff] %v573_v22  ;;  %v575_v24 = vadd.f32 %v574_v23, %v494_v21 }
  0xf1   :  { %580 = vst [vmem:[#allocation2 + $0x18] sm:$0xff] %v575_v24 }
  0xf2   :  { %612 = shalt.err (!%p609_p4)
}
  0xf3   :  { %s625_s20 = smov 256   ;;  %s626_s21 = smov 16  }
  0xf4   :  { %592 = dma.vmem_to_hbm [thread:$0]  %s587_s18, 512, %s702_s3, [#allocation3], %s625_s20, %s625_s20, %s626_s21  }
  0xf5   :  { %621 = dma.done.wait [#allocation3], 512  }
  0xf6   :  { %622 = vsyncadd [#allocation3], 4294966784 }
  0xf7   :  { %596 = vsyncpa [#allocation3], 1 }

</bundles_post_ra>
